<compile_context>
chip_gen: v6e
topology: v6e:2x2x1
jax: 0.10.0
libtpu: 0.0.40
codegen_flags: <defaults>
</compile_context>

<pallas_src>
import numpy as np
import jax
import jax.numpy as jnp
from jax.experimental import pallas as pl
from jax.experimental.pallas import tpu as pltpu

# ----------------------------- config -----------------------------
NUM_GRAPHS = 16          # graphs in the batch
NODES_PER_GRAPH = 16
N_NODES = NUM_GRAPHS * NODES_PER_GRAPH   # 256 total nodes
NUM_FEATURES = 16
NHID = 32
NUM_CLASSES = 8
BN_EPS = 1e-5
GIN_EPS = 0.0            # GINConv default eps, train_eps=False


# ----------------------------- kernel -----------------------------
def net_gin_kernel(adj_t_ref, pool_t_ref, x_ref, w_ref, b_ref, o_ref):
    # adj_t_ref : (N, N)        bf16  A_hat^T where A_hat = A + (1+eps)*I
    # pool_t_ref: (N, G)        bf16  pooling matrix transposed (0/1, exact)
    # x_ref     : (NHID, N)     bf16  x^T, zero-padded rows NUM_FEATURES..NHID-1
    # w_ref     : (8, NHID, NHID) bf16  [w1'^T(x3, BN folded), w2^T(x3), lw1^T,
    #                                    lw2^T zero-padded NUM_CLASSES->NHID rows]
    # b_ref     : (NHID, 8)     f32   matching bias columns (lb2 zero-padded)
    # o_ref     : (NUM_CLASSES, G) f32  transposed log-probs
    a_t = adj_t_ref[...]                                   # (N, N) bf16
    h = x_ref[...]                                         # (NHID, N) bf16

    def dense_relu(z_bf16, l):
        z = jnp.dot(w_ref[l], z_bf16, preferred_element_type=jnp.float32)
        return jnp.maximum(z + b_ref[:, l:l + 1], 0.0)     # (NHID,1) lane-broadcast

    for l in range(3):
        # GIN aggregation (self term folded into A_hat), K=256 contraction
        agg = jnp.dot(h, a_t, preferred_element_type=jnp.float32)   # (NHID, N) f32
        z = dense_relu(agg.astype(jnp.bfloat16), l)        # Linear (BN folded) + ReLU
        z = dense_relu(z.astype(jnp.bfloat16), 3 + l)      # Linear + ReLU
        h = z.astype(jnp.bfloat16)

    # global_add_pool -> (NHID, G)
    g = jnp.dot(h, pool_t_ref[...], preferred_element_type=jnp.float32)

    # lin1 + ReLU (dropout: eval mode -> identity)
    g = dense_relu(g.astype(jnp.bfloat16), 6)

    # lin2: classes on sublanes; rows >= NUM_CLASSES are zero padding
    logits = (jnp.dot(w_ref[7], g.astype(jnp.bfloat16),
                      preferred_element_type=jnp.float32) + b_ref[:, 7:8])
    logits = logits[:NUM_CLASSES, :]                       # drop padded class rows
    # log_softmax over the class (sublane) axis
    m = jnp.max(logits, axis=0, keepdims=True)
    shifted = logits - m
    lse = jnp.log(jnp.sum(jnp.exp(shifted), axis=0, keepdims=True))
    o_ref[...] = shifted - lse


def net_gin_forward(adj_t, pool_t, x_t, w_stack, b_slab):
    # Single grid-less invocation: everything lives in VMEM for the whole call.
    out_t = pl.pallas_call(
        net_gin_kernel,
        out_shape=jax.ShapeDtypeStruct((NUM_CLASSES, NUM_GRAPHS), jnp.float32),
        in_specs=[pl.BlockSpec(memory_space=pltpu.MemorySpace.VMEM)
                  for _ in range(5)],
        out_specs=pl.BlockSpec(memory_space=pltpu.MemorySpace.VMEM),
    )(adj_t, pool_t, x_t, w_stack, b_slab)
    # (classes, graphs) -> (graphs, classes): layout plumbing outside the kernel
    return out_t.T


# ----------------------------- params -----------------------------
def init_linear(key, fan_in, fan_out):
    kw, kb = jax.random.split(key)
    bound = 1.0 / np.sqrt(fan_in)
    w = jax.random.uniform(kw, (fan_in, fan_out), jnp.float32, -bound, bound)
    b = jax.random.uniform(kb, (fan_out,), jnp.float32, -bound, bound)
    return w, b


def make_raw_params(key):
    keys = jax.random.split(key, 8)
    convs = []
    fan_in = NUM_FEATURES
    for i in range(3):
        w1, b1 = init_linear(keys[2 * i], fan_in, NHID)
        # BatchNorm1d eval-mode parameters (defaults: gamma=1, beta=0, mean=0, var=1)
        gamma = jnp.ones((NHID,), jnp.float32)
        beta = jnp.zeros((NHID,), jnp.float32)
        mean = jnp.zeros((NHID,), jnp.float32)
        var = jnp.ones((NHID,), jnp.float32)
        w2, b2 = init_linear(keys[2 * i + 1], NHID, NHID)
        convs.append((w1, b1, gamma, beta, mean, var, w2, b2))
        fan_in = NHID
    lw1, lb1 = init_linear(keys[6], NHID, NHID)
    lw2, lb2 = init_linear(keys[7], NHID, NUM_CLASSES)
    return dict(convs=convs, lw1=lw1, lb1=lb1, lw2=lw2, lb2=lb2)


def pack_params(raw):
    """Fold eval BN into w1/b1, transpose all weights, pad, stack into 2 slabs."""
    w1ts, w2ts, b1s, b2s = [], [], [], []
    for (w1, b1, gamma, beta, mean, var, w2, b2) in raw["convs"]:
        s = gamma / jnp.sqrt(var + BN_EPS)              # general BN fold
        t = beta - mean * s
        w1f = (w1 * s[None, :]).T                       # (NHID, fan_in)
        b1f = b1 * s + t
        if w1f.shape[1] < NHID:                         # conv1: pad F -> NHID cols
            w1f = jnp.pad(w1f, ((0, 0), (0, NHID - w1f.shape[1])))
        w1ts.append(w1f); b1s.append(b1f)
        w2ts.append(w2.T); b2s.append(b2)
    lw2t = jnp.pad(raw["lw2"].T, ((0, NHID - NUM_CLASSES), (0, 0)))   # (NHID, NHID)
    lb2p = jnp.pad(raw["lb2"], (0, NHID - NUM_CLASSES))               # (NHID,)
    w_stack = jnp.stack(w1ts + w2ts + [raw["lw1"].T, lw2t],
                        axis=0).astype(jnp.bfloat16)                  # (8, NHID, NHID)
    b_slab = jnp.stack(b1s + b2s + [raw["lb1"], lb2p], axis=1)        # (NHID, 8) f32
    return w_stack, b_slab


# ----------------------------- references -----------------------------
def reference_packed(adj_t, pool_t, x_t, w_stack, b_slab):
    """Plain-JAX reference computing the identical bf16-operand / f32-acc math."""
    h = x_t
    for l in range(3):
        agg = jnp.dot(h, adj_t, preferred_element_type=jnp.float32)
        z = jnp.maximum(jnp.dot(w_stack[l], agg.astype(jnp.bfloat16),
                                preferred_element_type=jnp.float32)
                        + b_slab[:, l:l + 1], 0.0)
        z = jnp.maximum(jnp.dot(w_stack[3 + l], z.astype(jnp.bfloat16),
                                preferred_element_type=jnp.float32)
                        + b_slab[:, 3 + l:4 + l], 0.0)
        h = z.astype(jnp.bfloat16)
    g = jnp.dot(h, pool_t, preferred_element_type=jnp.float32)
    g = jnp.maximum(jnp.dot(w_stack[6], g.astype(jnp.bfloat16),
                            preferred_element_type=jnp.float32) + b_slab[:, 6:7], 0.0)
    logits = (jnp.dot(w_stack[7], g.astype(jnp.bfloat16),
                      preferred_element_type=jnp.float32) + b_slab[:, 7:8])
    logits = logits[:NUM_CLASSES, :].T                  # (G, NUM_CLASSES)
    m = jnp.max(logits, axis=-1, keepdims=True)
    sh = logits - m
    return sh - jnp.log(jnp.sum(jnp.exp(sh), axis=-1, keepdims=True))


def reference_f32(adj, pool, x, raw):
    """Pure-f32, unfolded reference matching the PyTorch eval-mode forward."""
    h = x
    for (w1, b1, gamma, beta, mean, var, w2, b2) in raw["convs"]:
        agg = (1.0 + GIN_EPS) * h + adj @ h
        z = agg @ w1 + b1
        z = (z - mean) / jnp.sqrt(var + BN_EPS) * gamma + beta
        z = jnp.maximum(z, 0.0)
        h = jnp.maximum(z @ w2 + b2, 0.0)
    g = pool @ h
    g = jnp.maximum(g @ raw["lw1"] + raw["lb1"], 0.0)
    logits = g @ raw["lw2"] + raw["lb2"]
    return jax.nn.log_softmax(logits, axis=-1)


# ----------------------------- main -----------------------------
if __name__ == "__main__":
    assert NUM_FEATURES <= NHID and NUM_CLASSES <= NHID

    key = jax.random.PRNGKey(0)
    k_x, k_p = jax.random.split(key)

    # Node features (data.x); transposed + zero-padded to NHID rows, bf16 in HBM.
    x = jax.random.normal(k_x, (N_NODES, NUM_FEATURES), jnp.float32)
    x_t = jnp.pad(x.T, ((0, NHID - NUM_FEATURES), (0, 0))).astype(jnp.bfloat16)

    # Deterministic edge_index: bidirectional ring per graph.
    src_list, dst_list = [], []
    for g in range(NUM_GRAPHS):
        base = g * NODES_PER_GRAPH
        for i in range(NODES_PER_GRAPH):
            a, b = base + i, base + (i + 1) % NODES_PER_GRAPH
            src_list += [a, b]
            dst_list += [b, a]
    edge_index = np.stack([np.array(src_list), np.array(dst_list)])

    # Dense adjacency A[dst, src] = 1 (sum aggregation); self term folded in;
    # entries {0, 1, 1+eps} with eps=0 are exact in bf16.
    adj_np = np.zeros((N_NODES, N_NODES), np.float32)
    adj_np[edge_index[1], edge_index[0]] += 1.0
    adj = jnp.asarray(adj_np)
    adj_hat = adj + (1.0 + GIN_EPS) * jnp.eye(N_NODES, dtype=jnp.float32)
    adj_t = adj_hat.T.astype(jnp.bfloat16)               # A_hat^T

    # Graph assignment (data.batch) and pooling matrix; transposed, bf16 (0/1 exact).
    batch = np.repeat(np.arange(NUM_GRAPHS), NODES_PER_GRAPH)
    pool_np = (batch[None, :] == np.arange(NUM_GRAPHS)[:, None]).astype(np.float32)
    pool = jnp.asarray(pool_np)                           # (G, N) f32 for reference
    pool_t = jnp.asarray(pool_np.T).astype(jnp.bfloat16)  # (N, G) bf16 for kernel

    raw = make_raw_params(k_p)
    w_stack, b_slab = pack_params(raw)

    out = net_gin_forward(adj_t, pool_t, x_t, w_stack, b_slab)
    out = jax.block_until_ready(out)
    assert out.shape == (NUM_GRAPHS, NUM_CLASSES)

    # Tight check: kernel vs. plain-JAX reference doing the identical
    # bf16-operand / f32-accumulate math (all folds are exact).
    ref = reference_packed(adj_t, pool_t, x_t, w_stack, b_slab)
    np.testing.assert_allclose(np.asarray(out), np.asarray(ref), rtol=1e-3, atol=1e-3)

    # Loose semantic check vs. pure-f32 PyTorch-style eval forward; the gap is
    # only bf16 rounding of MXU operands.
    ref32 = reference_f32(adj, pool, x, raw)
    np.testing.assert_allclose(np.asarray(out), np.asarray(ref32), rtol=0.1, atol=0.3)

    print("KERNEL_OK")
</pallas_src>

<mosaic_0001>
module attributes {stable_mosaic.version = 11 : i64} {
  func.func @net_gin_kernel(%arg0: memref<256x256xbf16, #tpu.memory_space<vmem>>, %arg1: memref<256x16xbf16, #tpu.memory_space<vmem>>, %arg2: memref<32x256xbf16, #tpu.memory_space<vmem>>, %arg3: memref<8x32x32xbf16, #tpu.memory_space<vmem>>, %arg4: memref<32x8xf32, #tpu.memory_space<vmem>>, %arg5: memref<8x16xf32, #tpu.memory_space<vmem>>) attributes {dimension_semantics = [], scalar_prefetch = 0 : i64, scratch_operands = 0 : i64, tpu.core_type = #tpu.core_type<tc>} {
    %c0 = arith.constant 0 : index
    %c0_0 = arith.constant 0 : index
    %0 = vector.load %arg0[%c0, %c0_0] : memref<256x256xbf16, #tpu.memory_space<vmem>>, vector<256x256xbf16>
    %c0_1 = arith.constant 0 : index
    %c0_2 = arith.constant 0 : index
    %1 = vector.load %arg2[%c0_1, %c0_2] : memref<32x256xbf16, #tpu.memory_space<vmem>>, vector<32x256xbf16>
    %cst = arith.constant dense<0.000000e+00> : vector<32x256xf32>
    %2 = tpu.matmul %1, %0, %cst {dimension_numbers = #tpu.dot_dimension_numbers<[1], [0], [0], [1], [0, 0, 1, 1], [], []>} : vector<32x256xbf16>, vector<256x256xbf16>, vector<32x256xf32> -> vector<32x256xf32>
    %3 = arith.truncf %2 : vector<32x256xf32> to vector<32x256xbf16>
    %c0_3 = arith.constant 0 : index
    %c0_4 = arith.constant 0 : index
    %c0_5 = arith.constant 0 : index
    %4 = vector.load %arg3[%c0_3, %c0_4, %c0_5] : memref<8x32x32xbf16, #tpu.memory_space<vmem>>, vector<1x32x32xbf16>
    %5 = vector.shape_cast %4 : vector<1x32x32xbf16> to vector<32x32xbf16>
    %cst_6 = arith.constant dense<0.000000e+00> : vector<32x256xf32>
    %6 = tpu.matmul %5, %3, %cst_6 {dimension_numbers = #tpu.dot_dimension_numbers<[1], [0], [0], [1], [0, 0, 1, 1], [], []>} : vector<32x32xbf16>, vector<32x256xbf16>, vector<32x256xf32> -> vector<32x256xf32>
    %c0_7 = arith.constant 0 : index
    %c0_8 = arith.constant 0 : index
    %7 = vector.load %arg4[%c0_7, %c0_8] : memref<32x8xf32, #tpu.memory_space<vmem>>, vector<32x1xf32>
    %8 = vector.broadcast %7 : vector<32x1xf32> to vector<32x256xf32>
    %9 = arith.addf %6, %8 : vector<32x256xf32>
    %cst_9 = arith.constant 0.000000e+00 : f32
    %10 = vector.broadcast %cst_9 : f32 to vector<32x256xf32>
    %11 = arith.maximumf %9, %10 : vector<32x256xf32>
    %12 = arith.truncf %11 : vector<32x256xf32> to vector<32x256xbf16>
    %c3 = arith.constant 3 : index
    %c0_10 = arith.constant 0 : index
    %c0_11 = arith.constant 0 : index
    %13 = vector.load %arg3[%c3, %c0_10, %c0_11] : memref<8x32x32xbf16, #tpu.memory_space<vmem>>, vector<1x32x32xbf16>
    %14 = vector.shape_cast %13 : vector<1x32x32xbf16> to vector<32x32xbf16>
    %cst_12 = arith.constant dense<0.000000e+00> : vector<32x256xf32>
    %15 = tpu.matmul %14, %12, %cst_12 {dimension_numbers = #tpu.dot_dimension_numbers<[1], [0], [0], [1], [0, 0, 1, 1], [], []>} : vector<32x32xbf16>, vector<32x256xbf16>, vector<32x256xf32> -> vector<32x256xf32>
    %c0_13 = arith.constant 0 : index
    %c3_14 = arith.constant 3 : index
    %16 = vector.load %arg4[%c0_13, %c3_14] : memref<32x8xf32, #tpu.memory_space<vmem>>, vector<32x1xf32>
    %17 = vector.broadcast %16 : vector<32x1xf32> to vector<32x256xf32>
    %18 = arith.addf %15, %17 : vector<32x256xf32>
    %cst_15 = arith.constant 0.000000e+00 : f32
    %19 = vector.broadcast %cst_15 : f32 to vector<32x256xf32>
    %20 = arith.maximumf %18, %19 : vector<32x256xf32>
    %21 = arith.truncf %20 : vector<32x256xf32> to vector<32x256xbf16>
    %cst_16 = arith.constant dense<0.000000e+00> : vector<32x256xf32>
    %22 = tpu.matmul %21, %0, %cst_16 {dimension_numbers = #tpu.dot_dimension_numbers<[1], [0], [0], [1], [0, 0, 1, 1], [], []>} : vector<32x256xbf16>, vector<256x256xbf16>, vector<32x256xf32> -> vector<32x256xf32>
    %23 = arith.truncf %22 : vector<32x256xf32> to vector<32x256xbf16>
    %c1 = arith.constant 1 : index
    %c0_17 = arith.constant 0 : index
    %c0_18 = arith.constant 0 : index
    %24 = vector.load %arg3[%c1, %c0_17, %c0_18] : memref<8x32x32xbf16, #tpu.memory_space<vmem>>, vector<1x32x32xbf16>
    %25 = vector.shape_cast %24 : vector<1x32x32xbf16> to vector<32x32xbf16>
    %cst_19 = arith.constant dense<0.000000e+00> : vector<32x256xf32>
    %26 = tpu.matmul %25, %23, %cst_19 {dimension_numbers = #tpu.dot_dimension_numbers<[1], [0], [0], [1], [0, 0, 1, 1], [], []>} : vector<32x32xbf16>, vector<32x256xbf16>, vector<32x256xf32> -> vector<32x256xf32>
    %c0_20 = arith.constant 0 : index
    %c1_21 = arith.constant 1 : index
    %27 = vector.load %arg4[%c0_20, %c1_21] : memref<32x8xf32, #tpu.memory_space<vmem>>, vector<32x1xf32>
    %28 = vector.broadcast %27 : vector<32x1xf32> to vector<32x256xf32>
    %29 = arith.addf %26, %28 : vector<32x256xf32>
    %cst_22 = arith.constant 0.000000e+00 : f32
    %30 = vector.broadcast %cst_22 : f32 to vector<32x256xf32>
    %31 = arith.maximumf %29, %30 : vector<32x256xf32>
    %32 = arith.truncf %31 : vector<32x256xf32> to vector<32x256xbf16>
    %c4 = arith.constant 4 : index
    %c0_23 = arith.constant 0 : index
    %c0_24 = arith.constant 0 : index
    %33 = vector.load %arg3[%c4, %c0_23, %c0_24] : memref<8x32x32xbf16, #tpu.memory_space<vmem>>, vector<1x32x32xbf16>
    %34 = vector.shape_cast %33 : vector<1x32x32xbf16> to vector<32x32xbf16>
    %cst_25 = arith.constant dense<0.000000e+00> : vector<32x256xf32>
    %35 = tpu.matmul %34, %32, %cst_25 {dimension_numbers = #tpu.dot_dimension_numbers<[1], [0], [0], [1], [0, 0, 1, 1], [], []>} : vector<32x32xbf16>, vector<32x256xbf16>, vector<32x256xf32> -> vector<32x256xf32>
    %c0_26 = arith.constant 0 : index
    %c4_27 = arith.constant 4 : index
    %36 = vector.load %arg4[%c0_26, %c4_27] : memref<32x8xf32, #tpu.memory_space<vmem>>, vector<32x1xf32>
    %37 = vector.broadcast %36 : vector<32x1xf32> to vector<32x256xf32>
    %38 = arith.addf %35, %37 : vector<32x256xf32>
    %cst_28 = arith.constant 0.000000e+00 : f32
    %39 = vector.broadcast %cst_28 : f32 to vector<32x256xf32>
    %40 = arith.maximumf %38, %39 : vector<32x256xf32>
    %41 = arith.truncf %40 : vector<32x256xf32> to vector<32x256xbf16>
    %cst_29 = arith.constant dense<0.000000e+00> : vector<32x256xf32>
    %42 = tpu.matmul %41, %0, %cst_29 {dimension_numbers = #tpu.dot_dimension_numbers<[1], [0], [0], [1], [0, 0, 1, 1], [], []>} : vector<32x256xbf16>, vector<256x256xbf16>, vector<32x256xf32> -> vector<32x256xf32>
    %43 = arith.truncf %42 : vector<32x256xf32> to vector<32x256xbf16>
    %c2 = arith.constant 2 : index
    %c0_30 = arith.constant 0 : index
    %c0_31 = arith.constant 0 : index
    %44 = vector.load %arg3[%c2, %c0_30, %c0_31] : memref<8x32x32xbf16, #tpu.memory_space<vmem>>, vector<1x32x32xbf16>
    %45 = vector.shape_cast %44 : vector<1x32x32xbf16> to vector<32x32xbf16>
    %cst_32 = arith.constant dense<0.000000e+00> : vector<32x256xf32>
    %46 = tpu.matmul %45, %43, %cst_32 {dimension_numbers = #tpu.dot_dimension_numbers<[1], [0], [0], [1], [0, 0, 1, 1], [], []>} : vector<32x32xbf16>, vector<32x256xbf16>, vector<32x256xf32> -> vector<32x256xf32>
    %c0_33 = arith.constant 0 : index
    %c2_34 = arith.constant 2 : index
    %47 = vector.load %arg4[%c0_33, %c2_34] : memref<32x8xf32, #tpu.memory_space<vmem>>, vector<32x1xf32>
    %48 = vector.broadcast %47 : vector<32x1xf32> to vector<32x256xf32>
    %49 = arith.addf %46, %48 : vector<32x256xf32>
    %cst_35 = arith.constant 0.000000e+00 : f32
    %50 = vector.broadcast %cst_35 : f32 to vector<32x256xf32>
    %51 = arith.maximumf %49, %50 : vector<32x256xf32>
    %52 = arith.truncf %51 : vector<32x256xf32> to vector<32x256xbf16>
    %c5 = arith.constant 5 : index
    %c0_36 = arith.constant 0 : index
    %c0_37 = arith.constant 0 : index
    %53 = vector.load %arg3[%c5, %c0_36, %c0_37] : memref<8x32x32xbf16, #tpu.memory_space<vmem>>, vector<1x32x32xbf16>
    %54 = vector.shape_cast %53 : vector<1x32x32xbf16> to vector<32x32xbf16>
    %cst_38 = arith.constant dense<0.000000e+00> : vector<32x256xf32>
    %55 = tpu.matmul %54, %52, %cst_38 {dimension_numbers = #tpu.dot_dimension_numbers<[1], [0], [0], [1], [0, 0, 1, 1], [], []>} : vector<32x32xbf16>, vector<32x256xbf16>, vector<32x256xf32> -> vector<32x256xf32>
    %c0_39 = arith.constant 0 : index
    %c5_40 = arith.constant 5 : index
    %56 = vector.load %arg4[%c0_39, %c5_40] : memref<32x8xf32, #tpu.memory_space<vmem>>, vector<32x1xf32>
    %57 = vector.broadcast %56 : vector<32x1xf32> to vector<32x256xf32>
    %58 = arith.addf %55, %57 : vector<32x256xf32>
    %cst_41 = arith.constant 0.000000e+00 : f32
    %59 = vector.broadcast %cst_41 : f32 to vector<32x256xf32>
    %60 = arith.maximumf %58, %59 : vector<32x256xf32>
    %61 = arith.truncf %60 : vector<32x256xf32> to vector<32x256xbf16>
    %c0_42 = arith.constant 0 : index
    %c0_43 = arith.constant 0 : index
    %62 = vector.load %arg1[%c0_42, %c0_43] : memref<256x16xbf16, #tpu.memory_space<vmem>>, vector<256x16xbf16>
    %cst_44 = arith.constant dense<0.000000e+00> : vector<32x16xf32>
    %63 = tpu.matmul %61, %62, %cst_44 {dimension_numbers = #tpu.dot_dimension_numbers<[1], [0], [0], [1], [0, 0, 1, 1], [], []>} : vector<32x256xbf16>, vector<256x16xbf16>, vector<32x16xf32> -> vector<32x16xf32>
    %64 = arith.truncf %63 : vector<32x16xf32> to vector<32x16xbf16>
    %c6 = arith.constant 6 : index
    %c0_45 = arith.constant 0 : index
    %c0_46 = arith.constant 0 : index
    %65 = vector.load %arg3[%c6, %c0_45, %c0_46] : memref<8x32x32xbf16, #tpu.memory_space<vmem>>, vector<1x32x32xbf16>
    %66 = vector.shape_cast %65 : vector<1x32x32xbf16> to vector<32x32xbf16>
    %cst_47 = arith.constant dense<0.000000e+00> : vector<32x16xf32>
    %67 = tpu.matmul %66, %64, %cst_47 {dimension_numbers = #tpu.dot_dimension_numbers<[1], [0], [0], [1], [0, 0, 1, 1], [], []>} : vector<32x32xbf16>, vector<32x16xbf16>, vector<32x16xf32> -> vector<32x16xf32>
    %c0_48 = arith.constant 0 : index
    %c6_49 = arith.constant 6 : index
    %68 = vector.load %arg4[%c0_48, %c6_49] : memref<32x8xf32, #tpu.memory_space<vmem>>, vector<32x1xf32>
    %69 = vector.broadcast %68 : vector<32x1xf32> to vector<32x16xf32>
    %70 = arith.addf %67, %69 : vector<32x16xf32>
    %cst_50 = arith.constant 0.000000e+00 : f32
    %71 = vector.broadcast %cst_50 : f32 to vector<32x16xf32>
    %72 = arith.maximumf %70, %71 : vector<32x16xf32>
    %c7 = arith.constant 7 : index
    %c0_51 = arith.constant 0 : index
    %c0_52 = arith.constant 0 : index
    %73 = vector.load %arg3[%c7, %c0_51, %c0_52] : memref<8x32x32xbf16, #tpu.memory_space<vmem>>, vector<1x32x32xbf16>
    %74 = vector.shape_cast %73 : vector<1x32x32xbf16> to vector<32x32xbf16>
    %75 = arith.truncf %72 : vector<32x16xf32> to vector<32x16xbf16>
    %cst_53 = arith.constant dense<0.000000e+00> : vector<32x16xf32>
    %76 = tpu.matmul %74, %75, %cst_53 {dimension_numbers = #tpu.dot_dimension_numbers<[1], [0], [0], [1], [0, 0, 1, 1], [], []>} : vector<32x32xbf16>, vector<32x16xbf16>, vector<32x16xf32> -> vector<32x16xf32>
    %c0_54 = arith.constant 0 : index
    %c7_55 = arith.constant 7 : index
    %77 = vector.load %arg4[%c0_54, %c7_55] : memref<32x8xf32, #tpu.memory_space<vmem>>, vector<32x1xf32>
    %78 = vector.broadcast %77 : vector<32x1xf32> to vector<32x16xf32>
    %79 = arith.addf %76, %78 : vector<32x16xf32>
    %80 = vector.extract_strided_slice %79 {offsets = [0, 0], sizes = [8, 16], strides = [1, 1]} : vector<32x16xf32> to vector<8x16xf32>
    %cst_56 = arith.constant dense<0xFF800000> : vector<16xf32>
    %81 = vector.multi_reduction <maximumf>, %80, %cst_56 [0] : vector<8x16xf32> to vector<16xf32>
    %82 = vector.shape_cast %81 : vector<16xf32> to vector<1x16xf32>
    %83 = vector.broadcast %82 : vector<1x16xf32> to vector<8x16xf32>
    %84 = arith.subf %80, %83 : vector<8x16xf32>
    %85 = math.exp %84 : vector<8x16xf32>
    %cst_57 = arith.constant dense<0.000000e+00> : vector<16xf32>
    %86 = vector.multi_reduction <add>, %85, %cst_57 [0] : vector<8x16xf32> to vector<16xf32>
    %87 = vector.shape_cast %86 : vector<16xf32> to vector<1x16xf32>
    %88 = math.log %87 : vector<1x16xf32>
    %89 = vector.broadcast %88 : vector<1x16xf32> to vector<8x16xf32>
    %90 = arith.subf %84, %89 : vector<8x16xf32>
    %c0_58 = arith.constant 0 : index
    %c0_59 = arith.constant 0 : index
    %91 = vector.load %arg5[%c0_58, %c0_59] : memref<8x16xf32, #tpu.memory_space<vmem>>, vector<8x16xf32>
    tpu.vector_store %arg5[%c0_58, %c0_59], %90 {strides = array<i32>} : memref<8x16xf32, #tpu.memory_space<vmem>>, vector<8x16xf32>,
    return
  }
}

</mosaic_0001>

<bundles_post_ra>
// kernel: tpu_custom_call.1
= control target key start
LH: loop header
LB: loop body
LE: loop exit
PB: predicated region body
PF: predicated region fallthrough
CT: control target
= control target key end

     0   :  { %10 = vsyncpa [#allocation3], 0  ;;  %s2154_s0 = inlined_call_operand.hbm [shape: bf16[256,256], index: 0, kind: input, shape index: {}]   ;;  %s2155_s1 = inlined_call_operand.vmem [shape: bf16[256,16], index: 1, kind: input, shape index: {}]   ;;  %s2156_s2 = inlined_call_operand.vmem [shape: bf16[32,256], index: 2, kind: input, shape index: {}]   ;;  %s2157_s3 = inlined_call_operand.vmem [shape: bf16[8,32,32], index: 3, kind: input, shape index: {}]   ;;  %s2158_s4 = inlined_call_operand.vmem [shape: f32[32,8], index: 4, kind: input, shape index: {}]   ;;  %s2159_s5 = inlined_call_operand.hbm [shape: f32[8,16], index: 5, kind: output, shape index: {}]  }
   0x1   :  { %11 = vsyncpa [#allocation4], 0  ;;  %s1756_s18 = smov [#allocation2]  }
   0x2   :  { %s17_s19 = sshll.u32 %s1756_s18, 4  ;;  %s18_s19 = int_to_ptr.vmem [resolvable:$true] %s17_s19 }
   0x3   :  { %s1720_s20 = scalar_lea.vmem %s18_s19, 4096  ;;  %p1725_p1 = scmp.lt.s32.totalorder %s18_s19, %s18_s19 }
   0x4   :  { %p1721_p0 = scmp.ne.s32.totalorder %s18_s19, %s1720_s20  ;;  %p1726_p2 = scmp.lt.s32.totalorder %s1720_s20, %s1720_s20 }
   0x6   :  { %p1727_p3 = por %p1726_p2, %p1725_p1 }
   0x8   :  { %p1728_p4 = pnand %p1727_p3, %p1721_p0 }
   0xa   :  { %1731 = shalt.err (!%p1728_p4)
}
   0xb   :  { %s1757_s21 = smov 128   ;;  %s1758_s22 = smov 8  }
   0xc   :  { %23 = dma.hbm_to_vmem [thread:$0]  %s2154_s0, 4096, %s18_s19, [#allocation3], %s1757_s21, %s1757_s21, %s1758_s22  }
   0xd   :  { %1752 = dma.done.wait [#allocation3], 4096  }
   0xe   :  { %1753 = vsyncadd [#allocation3], 4294963200  ;;  %v1801_v0 = vld [vmem:[#allocation2 + $0x74] ss:$8 sps:$4 sm:$0xff]   ;;  %v1803_v1 = vld [vmem:[#allocation2 + $0x70] ss:$8 sps:$4 sm:$0xff]  }
   0xf   :  { %252 = vmatprep.subr.bf16.mxu0 %v1801_v0  ;;  %v1806_v2 = vld [vmem:[#allocation2 + $0x64] ss:$8 sps:$4 sm:$0xff]   ;;  %v1809_v3 = vld [vmem:[#allocation2 + $0x60] ss:$8 sps:$4 sm:$0xff]   ;;  %v1812_v4 = vld [vmem:[#allocation2 + $0x54] ss:$8 sps:$4 sm:$0xff]  }
  0x10   :  { %253 = vmatpush1.bf16.msra.mxu0 %v1803_v1  ;;  %v1815_v5 = vld [vmem:[#allocation2 + $0x50] ss:$8 sps:$4 sm:$0xff]   ;;  %v1818_v6 = vld [vmem:[#allocation2 + $0x44] ss:$8 sps:$4 sm:$0xff]   ;;  %v1821_v7 = vld [vmem:[#allocation2 + $0x40] ss:$8 sps:$4 sm:$0xff]  }
  0x11   :  { %254 = vmatprep.subr.bf16.mxu0 %v1806_v2  ;;  %v1824_v8 = vld [vmem:[#allocation2 + $0x34] ss:$8 sps:$4 sm:$0xff]   ;;  %v1827_v9 = vld [vmem:[#allocation2 + $0x30] ss:$8 sps:$4 sm:$0xff]   ;;  %v1830_v10 = vld [vmem:[#allocation2 + $0x24] ss:$8 sps:$4 sm:$0xff]  }
  0x12   :  { %v1833_v11 = vld [vmem:[#allocation2 + $0x20] ss:$8 sps:$4 sm:$0xff]   ;;  %v1836_v12 = vld [vmem:[#allocation2 + $0x14] ss:$8 sps:$4 sm:$0xff]   ;;  %v1672_v13 = vld [vmem:[%s2156_s2 + $0x4] ss:$8 sps:$4 sm:$0xff]  }
  0x13   :  { %v1842_v14 = vld [vmem:[#allocation2 + $0x10] ss:$8 sps:$4 sm:$0xff]   ;;  %v1844_v15 = vld [vmem:[#allocation2 + $0x4] ss:$8 sps:$4 sm:$0xff]   ;;  %284 = vmatprep.mubr.bf16.mxu0 %v1672_v13  ;;  %v1847_v16 = vld [vmem:[#allocation2] ss:$8 sps:$4 sm:$0xff]  }
  0x14   :  { %255 = vmatpush1.bf16.msra.mxu0 %v1809_v3  ;;  %v1849_v17 = vld [vmem:[#allocation2 + $0xf4] ss:$8 sps:$4 sm:$0xff]   ;;  %v1853_v18 = vld [vmem:[#allocation2 + $0xf0] ss:$8 sps:$4 sm:$0xff]   ;;  %v1855_v19 = vld [vmem:[#allocation2 + $0xe4] ss:$8 sps:$4 sm:$0xff]  }
  0x15   :  { %256 = vmatprep.subr.bf16.mxu0 %v1812_v4  ;;  %v1859_v20 = vld [vmem:[#allocation2 + $0xe0] ss:$8 sps:$4 sm:$0xff]   ;;  %v1861_v21 = vld [vmem:[#allocation2 + $0xd4] ss:$8 sps:$4 sm:$0xff]   ;;  %v1865_v22 = vld [vmem:[#allocation2 + $0xd0] ss:$8 sps:$4 sm:$0xff]  }
  0x16   :  { %v1867_v23 = vld [vmem:[#allocation2 + $0xc4] ss:$8 sps:$4 sm:$0xff]   ;;  %v1871_v24 = vld [vmem:[#allocation2 + $0xc0] ss:$8 sps:$4 sm:$0xff]   ;;  %v1873_v25 = vld [vmem:[#allocation2 + $0xb4] ss:$8 sps:$4 sm:$0xff]  }
  0x17   :  { %v1878_v26 = vld [vmem:[#allocation2 + $0xb0] ss:$8 sps:$4 sm:$0xff]   ;;  %v1881_v27 = vld [vmem:[#allocation2 + $0xa4] ss:$8 sps:$4 sm:$0xff]   ;;  %v1884_v28 = vld [vmem:[#allocation2 + $0xa0] ss:$8 sps:$4 sm:$0xff]  }
  0x18   :  { %257 = vmatpush1.bf16.msra.mxu0 %v1815_v5  ;;  %v1887_v29 = vld [vmem:[#allocation2 + $0x94] ss:$8 sps:$4 sm:$0xff]   ;;  %v1890_v30 = vld [vmem:[#allocation2 + $0x90] ss:$8 sps:$4 sm:$0xff]   ;;  %v1893_v31 = vld [vmem:[#allocation2 + $0x84] ss:$8 sps:$4 sm:$0xff]  }
  0x19   :  { %258 = vmatprep.subr.bf16.mxu0 %v1818_v6  ;;  %v1896_v32 = vld [vmem:[#allocation2 + $0x80] ss:$8 sps:$4 sm:$0xff]   ;;  %v1673_v34 = vld [vmem:[%s2156_s2 + $0x14] ss:$8 sps:$4 sm:$0xff]   ;;  %v1675_v35 = vld [vmem:[%s2156_s2 + $0x10] ss:$8 sps:$4 sm:$0xff]  }
  0x1a   :  { %v1670_v33 = vld [vmem:[%s2156_s2] ss:$8 sps:$4 sm:$0xff]   ;;  %v2160_v36 = vmov 0   ;;  %v1921_v38 = vld [vmem:[%s2158_s4 + $0x10] sm:$0xff]  ;;  %v1933_v40 = vld [vmem:[%s2158_s4 + $0x18] sm:$0xff]  ;;  %vm347_vm0 = vcmask 261120  }
  0x1b   :  { %386 = vmatprep.mubr.bf16.mxu1 %v2160_v36  ;;  %1608 = vset.pattern.permute.xlu1 %v2160_v36  ;;  %v1916_v37 = vld [vmem:[%s2158_s4] sm:$0xff]  ;;  %v1928_v39 = vld [vmem:[%s2158_s4 + $0x8] sm:$0xff]  ;;  %v1760_v55 = vmov 3   ;;  %vm1394_vm1 = vcmask 130048  }
  0x1c   :  { %259 = vmatpush1.bf16.msra.mxu0 %v1821_v7  ;;  %1607 = vset.pattern.permute.xlu0 %v2160_v36  ;;  %2166 = vst [vmem:[#allocation8_spill] sm:$0xff] %v1916_v37  ;;  %2167 = vst [vmem:[#allocation9_spill] sm:$0xff] %v1928_v39  ;;  %v1676_v53 = vld [vmem:[%s2157_s3] sm:$0xff]   ;;  %v1677_v54 = vld [vmem:[%s2157_s3 + $0x8] sm:$0xff]  }
  0x1d   :  { %260 = vmatprep.subr.bf16.mxu0 %v1824_v8  ;;  %319 = vperm.xlu1 %1608, %v1916_v37  }
  0x1e   :  { %329 = vperm.xlu0 %1607, %v1921_v38  }
  0x20   :  { %261 = vmatpush1.bf16.msra.mxu0 %v1827_v9 }
  0x21   :  { %262 = vmatprep.subr.bf16.mxu0 %v1830_v10  ;;  %324 = vperm.xlu1 %1608, %v1928_v39  }
  0x22   :  { %334 = vperm.xlu0 %1607, %v1933_v40  }
  0x24   :  { %263 = vmatpush1.bf16.msra.mxu0 %v1833_v11 }
  0x25   :  { %264 = vmatprep.subr.bf16.mxu0 %v1836_v12  ;;  %1610 = vset.pattern.permute.xlu1 %v1760_v55 }
  0x26   :  { %1609 = vset.pattern.permute.xlu0 %v1760_v55  ;;  %429 = vperm.xlu1 %1610, %v1928_v39  }
  0x27   :  { %425 = vperm.xlu0 %1609, %v1916_v37  }
  0x28   :  { %265 = vmatpush1.bf16.msra.mxu0 %v1842_v14 }
  0x29   :  { %266 = vmatprep.subr.bf16.mxu0 %v1844_v15 }
  0x2a   :  { %433 = vperm.xlu1 %1610, %v1921_v38  }
  0x2b   :  { %437 = vperm.xlu0 %1609, %v1933_v40  }
  0x2c   :  { %267 = vmatpush1.bf16.msra.mxu0 %v1847_v16 }
  0x2d   :  { %268 = vmatprep.subr.bf16.mxu0 %v1849_v17 }
  0x30   :  { %269 = vmatpush2.bf16.msra.mxu0 %v1853_v18 }
  0x31   :  { %270 = vmatprep.subr.bf16.mxu0 %v1855_v19 }
  0x34   :  { %271 = vmatpush2.bf16.msra.mxu0 %v1859_v20 }
  0x35   :  { %272 = vmatprep.subr.bf16.mxu0 %v1861_v21 }
  0x38   :  { %273 = vmatpush2.bf16.msra.mxu0 %v1865_v22 }
  0x39   :  { %274 = vmatprep.subr.bf16.mxu0 %v1867_v23 }
  0x3c   :  { %275 = vmatpush2.bf16.msra.mxu0 %v1871_v24 }
  0x3d   :  { %276 = vmatprep.subr.bf16.mxu0 %v1873_v25 }
  0x40   :  { %277 = vmatpush2.bf16.msra.mxu0 %v1878_v26 }
  0x41   :  { %278 = vmatprep.subr.bf16.mxu0 %v1881_v27 }
  0x44   :  { %279 = vmatpush2.bf16.msra.mxu0 %v1884_v28 }
  0x45   :  { %280 = vmatprep.subr.bf16.mxu0 %v1887_v29 }
  0x48   :  { %281 = vmatpush2.bf16.msra.mxu0 %v1890_v30 }
  0x49   :  { %282 = vmatprep.subr.bf16.mxu0 %v1893_v31 }
  0x4c   :  { %283 = vmatpush2.bf16.msra.mxu0 %v1896_v32 }
  0x4f   :  { %285 = vmatmul.mubr.bf16.vlgmr.msra.gmra.mxu0 %v1670_v33 }
  0x50   :  { %294 = vmatprep.mubr.bf16.mxu0 %v1673_v34 }
  0x57   :  { %295 = vmatmul.mubr.bf16.gmra.mxu0 %v1675_v35 }
  0x58   :  { %647 = vmatprep.mubr.bf16.mxu0 %v2160_v36 }
  0x98   :  { %v320_v59 = vpop.permute.xlu1 %319 }
  0x99   :  { %v330_v60 = vpop.permute.xlu0 %329 }
  0x9c   :  { %v325_v13 = vpop.permute.xlu1 %324 }
  0x9d   :  { %v335_v33 = vpop.permute.xlu0 %334 }
 0x10f   :  { %v286_v41 = vpop.f32.mrf.mxu0 }
 0x111   :  { %v288_v42 = vpop.f32.mrf.mxu0 }
 0x113   :  { %v290_v43 = vpop.f32.mrf.mxu0 }
 0x114   :  { %v305_v52 = vpack.c.bf16 %v290_v43, %v286_v41 }
 0x115   :  { %v292_v44 = vpop.f32.mrf.mxu0 }
 0x116   :  { %v306_v51 = vpack.c.bf16 %v292_v44, %v288_v42 }
 0x117   :  { %v296_v45 = vpop.f32.mrf.mxu0 }
 0x119   :  { %v298_v46 = vpop.f32.mrf.mxu0 }
 0x11b   :  { %v300_v47 = vpop.f32.mrf.mxu0 }
 0x11c   :  { %v307_v50 = vpack.c.bf16 %v300_v47, %v296_v45 }
 0x11d   :  { %v302_v48 = vpop.f32.mrf.mxu0 }
 0x11e   :  { %v308_v49 = vpack.c.bf16 %v302_v48, %v298_v46 }
 0x120   :  { %366 = vmatprep.subr.bf16.mxu1 %v308_v49 }
 0x121   :  { %367 = vmatpush1.bf16.msra.mxu1 %v307_v50 }
 0x122   :  { %368 = vmatprep.subr.bf16.mxu1 %v306_v51 }
 0x125   :  { %369 = vmatpush1.bf16.msra.mxu1 %v305_v52 }
 0x128   :  { %1469 = vmatmul.mubr.msk.bf16.vlgmr.msra.gmra.mxu1 %vm347_vm0, %v1676_v53 }
 0x129   :  { %396 = vmatprep.mubr.bf16.mxu1 %v2160_v36 }
 0x130   :  { %1470 = vmatmul.mubr.msk.bf16.gmra.mxu1 %vm347_vm0, %v1677_v54 }
 0x131   :  { %488 = vmatprep.mubr.bf16.mxu1 %v2160_v36 }
 0x1e8   :  { %v388_v56 = vpop.f32.mrf.mxu1 }
 0x1e9   :  { %v389_v52 = vadd.f32 %v388_v56, %v320_v59  ;;  %v2168_v56 = vmov 0  }
 0x1ea   :  { %v390_v57 = vpop.f32.mrf.mxu1 }
 0x1eb   :  { %v391_v45 = vadd.f32 %v390_v57, %v320_v59  ;;  %v1678_v57 = vld [vmem:[%s2157_s3 + $0x30] sm:$0xff]   ;;  %v430_v59 = vpop.permute.xlu1 %429 }
 0x1ec   :  { %v392_v58 = vpop.f32.mrf.mxu1 }
 0x1ed   :  { %v393_v47 = vadd.f32 %v392_v58, %v325_v13  ;;  %v408_v54 = vmax.f32 %v391_v45, 0.0  ;;  %v426_v58 = vpop.permute.xlu0 %425 }
 0x1ee   :  { %v394_v61 = vpop.f32.mrf.mxu1 }
 0x1ef   :  { %v395_v35 = vadd.f32 %v394_v61, %v325_v13  ;;  %v409_v36 = vmax.f32 %v393_v47, 0.0  ;;  %v407_v61 = vmax.f32 %v389_v52, 0.0 }
 0x1f0   :  { %v398_v62 = vpop.f32.mrf.mxu1 }
 0x1f1   :  { %v399_v43 = vadd.f32 %v398_v62, %v330_v60  ;;  %v410_v49 = vmax.f32 %v395_v35, 0.0  ;;  %v438_v47 = vpop.permute.xlu0 %437 }
 0x1f2   :  { %v400_v63 = vpop.f32.mrf.mxu1 }
 0x1f3   :  { %v401_v41 = vadd.f32 %v400_v63, %v330_v60  ;;  %v411_v53 = vmax.f32 %v399_v43, 0.0  ;;  %v416_v37 = vpack.c.bf16 %v410_v49, %v408_v54  ;;  %v415_v60 = vpack.c.bf16 %v409_v36, %v407_v61 }
 0x1f4   :  { %v402_v34 = vpop.f32.mrf.mxu1 }
 0x1f5   :  { %v403_v42 = vadd.f32 %v402_v34, %v335_v33  ;;  %v412_v50 = vmax.f32 %v401_v41, 0.0 }
 0x1f6   :  { %v404_v44 = vpop.f32.mrf.mxu1 }
 0x1f7   :  { %v405_v46 = vadd.f32 %v404_v44, %v335_v33  ;;  %v413_v48 = vmax.f32 %v403_v42, 0.0 }
 0x1f9   :  { %v414_v51 = vmax.f32 %v405_v46, 0.0  ;;  %v417_v39 = vpack.c.bf16 %v413_v48, %v411_v53 }
 0x1fb   :  { %v418_v55 = vpack.c.bf16 %v414_v51, %v412_v50 }
 0x1fd   :  { %468 = vmatprep.subr.bf16.mxu1 %v418_v55 }
 0x1fe   :  { %469 = vmatpush1.bf16.msra.mxu1 %v417_v39 }
 0x1ff   :  { %470 = vmatprep.subr.bf16.mxu1 %v416_v37  ;;  %v1679_v37 = vld [vmem:[%s2157_s3 + $0x38] sm:$0xff]  }
 0x202   :  { %471 = vmatpush1.bf16.msra.mxu1 %v415_v60 }
 0x203   :  { %521 = vmatprep.subr.bf16.mxu1 %v1801_v0 }
 0x205   :  { %1477 = vmatmul.mubr.msk.bf16.vlgmr.msra.gmra.mxu1 %vm347_vm0, %v1678_v57 }
 0x206   :  { %498 = vmatprep.mubr.bf16.mxu1 %v2168_v56  ;;  %522 = vmatpush1.bf16.msra.mxu1 %v1803_v1 }
 0x207   :  { %523 = vmatprep.subr.bf16.mxu1 %v1806_v2 }
 0x20a   :  { %524 = vmatpush1.bf16.msra.mxu1 %v1809_v3 }
 0x20b   :  { %525 = vmatprep.subr.bf16.mxu1 %v1812_v4 }
 0x20d   :  { %1478 = vmatmul.mubr.msk.bf16.gmra.mxu1 %vm347_vm0, %v1679_v37 }
 0x20e   :  { %526 = vmatpush1.bf16.msra.mxu1 %v1815_v5 }
 0x20f   :  { %527 = vmatprep.subr.bf16.mxu1 %v1818_v6 }
 0x212   :  { %528 = vmatpush1.bf16.msra.mxu1 %v1821_v7 }
 0x213   :  { %529 = vmatprep.subr.bf16.mxu1 %v1824_v8 }
 0x216   :  { %530 = vmatpush1.bf16.msra.mxu1 %v1827_v9 }
 0x217   :  { %531 = vmatprep.subr.bf16.mxu1 %v1830_v10 }
 0x21a   :  { %532 = vmatpush1.bf16.msra.mxu1 %v1833_v11 }
 0x21b   :  { %533 = vmatprep.subr.bf16.mxu1 %v1836_v12 }
 0x21e   :  { %534 = vmatpush1.bf16.msra.mxu1 %v1842_v14 }
 0x21f   :  { %535 = vmatprep.subr.bf16.mxu1 %v1844_v15 }
 0x222   :  { %536 = vmatpush1.bf16.msra.mxu1 %v1847_v16 }
 0x223   :  { %537 = vmatprep.subr.bf16.mxu1 %v1849_v17 }
 0x226   :  { %538 = vmatpush2.bf16.msra.mxu1 %v1853_v18 }
 0x227   :  { %539 = vmatprep.subr.bf16.mxu1 %v1855_v19 }
 0x22a   :  { %540 = vmatpush2.bf16.msra.mxu1 %v1859_v20 }
 0x22b   :  { %541 = vmatprep.subr.bf16.mxu1 %v1861_v21 }
 0x22e   :  { %542 = vmatpush2.bf16.msra.mxu1 %v1865_v22 }
 0x22f   :  { %543 = vmatprep.subr.bf16.mxu1 %v1867_v23 }
 0x232   :  { %544 = vmatpush2.bf16.msra.mxu1 %v1871_v24 }
 0x233   :  { %545 = vmatprep.subr.bf16.mxu1 %v1873_v25 }
 0x236   :  { %546 = vmatpush2.bf16.msra.mxu1 %v1878_v26 }
 0x237   :  { %547 = vmatprep.subr.bf16.mxu1 %v1881_v27 }
 0x23a   :  { %548 = vmatpush2.bf16.msra.mxu1 %v1884_v28 }
 0x23b   :  { %549 = vmatprep.subr.bf16.mxu1 %v1887_v29 }
 0x23e   :  { %550 = vmatpush2.bf16.msra.mxu1 %v1890_v30 }
 0x23f   :  { %551 = vmatprep.subr.bf16.mxu1 %v1893_v31 }
 0x242   :  { %552 = vmatpush2.bf16.msra.mxu1 %v1896_v32 }
 0x243   :  { %782 = vmatprep.subr.bf16.mxu1 %v1801_v0  ;;  %v434_v0 = vpop.permute.xlu1 %433 }
 0x2c5   :  { %v490_v36 = vpop.f32.mrf.mxu1 }
 0x2c6   :  { %v491_v33 = vadd.f32 %v490_v36, %v426_v58 }
 0x2c7   :  { %v492_v39 = vpop.f32.mrf.mxu1 }
 0x2c8   :  { %v493_v63 = vadd.f32 %v492_v39, %v426_v58  ;;  %v509_v45 = vmax.f32 %v491_v33, 0.0 }
 0x2c9   :  { %v494_v62 = vpop.f32.mrf.mxu1 }
 0x2ca   :  { %v495_v13 = vadd.f32 %v494_v62, %v430_v59  ;;  %v510_v43 = vmax.f32 %v493_v63, 0.0 }
 0x2cb   :  { %v496_v34 = vpop.f32.mrf.mxu1 }
 0x2cc   :  { %v497_v35 = vadd.f32 %v496_v34, %v430_v59  ;;  %v511_v41 = vmax.f32 %v495_v13, 0.0 }
 0x2cd   :  { %v500_v42 = vpop.f32.mrf.mxu1 }
 0x2ce   :  { %v512_v44 = vmax.f32 %v497_v35, 0.0  ;;  %v517_v49 = vpack.c.bf16 %v511_v41, %v509_v45  ;;  %v501_v53 = vadd.f32 %v500_v42, %v434_v0 }
 0x2cf   :  { %v502_v46 = vpop.f32.mrf.mxu1 }
 0x2d0   :  { %v518_v48 = vpack.c.bf16 %v512_v44, %v510_v43  ;;  %v503_v51 = vadd.f32 %v502_v46, %v434_v0  ;;  %v513_v37 = vmax.f32 %v501_v53, 0.0 }
 0x2d1   :  { %v504_v50 = vpop.f32.mrf.mxu1 }
 0x2d2   :  { %v505_v52 = vadd.f32 %v504_v50, %v438_v47  ;;  %553 = vmatprep.mubr.bf16.mxu1 %v518_v48  ;;  %v514_v60 = vmax.f32 %v503_v51, 0.0  ;;  %v1682_v51 = vld [vmem:[%s2157_s3 + $0x40] sm:$0xff]  }
 0x2d3   :  { %v506_v54 = vpop.f32.mrf.mxu1  ;;  %554 = vmatmul.mubr.bf16.vlgmr.msra.gmra.mxu1 %v517_v49 }
 0x2d4   :  { %v507_v55 = vadd.f32 %v506_v54, %v438_v47  ;;  %783 = vmatpush1.bf16.msra.mxu1 %v1803_v1  ;;  %v515_v61 = vmax.f32 %v505_v52, 0.0  ;;  %v1761_v1 = vmov 1   ;;  %v1683_v52 = vld [vmem:[%s2157_s3 + $0x48] sm:$0xff]  }
 0x2d5   :  { %784 = vmatprep.subr.bf16.mxu1 %v1806_v2  ;;  %1611 = vset.pattern.permute.xlu1 %v1761_v1  ;;  %v2169_v2 = vld [vmem:[#allocation8_spill] sm:$0xff] }
 0x2d6   :  { %v516_v57 = vmax.f32 %v507_v55, 0.0  ;;  %v519_v39 = vpack.c.bf16 %v515_v61, %v513_v37  ;;  %1612 = vset.pattern.permute.xlu0 %v1761_v1  ;;  %592 = vperm.xlu1 %1611, %v1921_v38  }
 0x2d7   :  { %596 = vperm.xlu0 %1612, %v1933_v40  }
 0x2d8   :  { %v520_v36 = vpack.c.bf16 %v516_v57, %v514_v60  ;;  %785 = vmatpush1.bf16.msra.mxu1 %v1809_v3  ;;  %v2170_v3 = vld [vmem:[#allocation9_spill] sm:$0xff] }
 0x2d9   :  { %786 = vmatprep.subr.bf16.mxu1 %v1812_v4 }
 0x2da   :  { %563 = vmatprep.mubr.bf16.mxu1 %v520_v36  ;;  %584 = vperm.xlu1 %1611, %v2169_v2  }
 0x2db   :  { %564 = vmatmul.mubr.bf16.gmra.mxu1 %v519_v39 }
 0x2dc   :  { %787 = vmatpush1.bf16.msra.mxu1 %v1815_v5 }
 0x2dd   :  { %788 = vmatprep.subr.bf16.mxu1 %v1818_v6 }
 0x2de   :  { %588 = vperm.xlu1 %1611, %v2170_v3  }
 0x2e0   :  { %789 = vmatpush1.bf16.msra.mxu1 %v1821_v7 }
 0x2e1   :  { %790 = vmatprep.subr.bf16.mxu1 %v1824_v8 }
 0x2e4   :  { %791 = vmatpush1.bf16.msra.mxu1 %v1827_v9 }
 0x2e5   :  { %792 = vmatprep.subr.bf16.mxu1 %v1830_v10 }
 0x2e8   :  { %793 = vmatpush1.bf16.msra.mxu1 %v1833_v11 }
 0x2e9   :  { %794 = vmatprep.subr.bf16.mxu1 %v1836_v12 }
 0x2ec   :  { %795 = vmatpush1.bf16.msra.mxu1 %v1842_v14 }
 0x2ed   :  { %796 = vmatprep.subr.bf16.mxu1 %v1844_v15 }
 0x2f0   :  { %797 = vmatpush1.bf16.msra.mxu1 %v1847_v16 }
 0x2f1   :  { %798 = vmatprep.subr.bf16.mxu1 %v1849_v17  ;;  %v1680_v17 = vld [vmem:[%s2157_s3 + $0x10] sm:$0xff]  }
 0x2f4   :  { %799 = vmatpush2.bf16.msra.mxu1 %v1853_v18  ;;  %v1681_v18 = vld [vmem:[%s2157_s3 + $0x18] sm:$0xff]  }
 0x2f5   :  { %800 = vmatprep.subr.bf16.mxu1 %v1855_v19  ;;  %v1762_v19 = vmov 4  }
 0x2f6   :  { %1613 = vset.pattern.permute.xlu0 %v1762_v19  ;;  %1614 = vset.pattern.permute.xlu1 %v1762_v19 }
 0x2f7   :  { %686 = vperm.xlu0 %1613, %v2169_v2   ;;  %690 = vperm.xlu1 %1614, %v2170_v3  }
 0x2f8   :  { %801 = vmatpush2.bf16.msra.mxu1 %v1859_v20 }
 0x2f9   :  { %802 = vmatprep.subr.bf16.mxu1 %v1861_v21 }
 0x2fb   :  { %698 = vperm.xlu0 %1613, %v1933_v40   ;;  %694 = vperm.xlu1 %1614, %v1921_v38  }
 0x2fc   :  { %803 = vmatpush2.bf16.msra.mxu1 %v1865_v22 }
 0x2fd   :  { %804 = vmatprep.subr.bf16.mxu1 %v1867_v23 }
 0x300   :  { %805 = vmatpush2.bf16.msra.mxu1 %v1871_v24 }
 0x301   :  { %806 = vmatprep.subr.bf16.mxu1 %v1873_v25 }
 0x304   :  { %807 = vmatpush2.bf16.msra.mxu1 %v1878_v26 }
 0x305   :  { %808 = vmatprep.subr.bf16.mxu1 %v1881_v27 }
 0x308   :  { %809 = vmatpush2.bf16.msra.mxu1 %v1884_v28 }
 0x309   :  { %810 = vmatprep.subr.bf16.mxu1 %v1887_v29 }
 0x30c   :  { %811 = vmatpush2.bf16.msra.mxu1 %v1890_v30 }
 0x30d   :  { %812 = vmatprep.subr.bf16.mxu1 %v1893_v31 }
 0x310   :  { %813 = vmatpush2.bf16.msra.mxu1 %v1896_v32 }
 0x351   :  { %v593_v20 = vpop.permute.xlu1 %592 }
 0x352   :  { %v597_v28 = vpop.permute.xlu0 %596 }
 0x355   :  { %v585_v24 = vpop.permute.xlu1 %584 }
 0x359   :  { %v589_v29 = vpop.permute.xlu1 %588 }
 0x372   :  { %v687_v55 = vpop.permute.xlu0 %686  ;;  %v691_v61 = vpop.permute.xlu1 %690 }
 0x393   :  { %v555_v4 = vpop.f32.mrf.mxu1 }
 0x395   :  { %v557_v5 = vpop.f32.mrf.mxu1 }
 0x397   :  { %v559_v6 = vpop.f32.mrf.mxu1 }
 0x398   :  { %v574_v16 = vpack.c.bf16 %v559_v6, %v555_v4 }
 0x399   :  { %v561_v7 = vpop.f32.mrf.mxu1 }
 0x39a   :  { %v575_v15 = vpack.c.bf16 %v561_v7, %v557_v5 }
 0x39b   :  { %v565_v8 = vpop.f32.mrf.mxu1 }
 0x39d   :  { %v567_v9 = vpop.f32.mrf.mxu1 }
 0x39f   :  { %v569_v10 = vpop.f32.mrf.mxu1 }
 0x3a0   :  { %v576_v14 = vpack.c.bf16 %v569_v10, %v565_v8  ;;  %v699_v10 = vpop.permute.xlu0 %698 }
 0x3a1   :  { %v571_v11 = vpop.f32.mrf.mxu1 }
 0x3a2   :  { %v577_v12 = vpack.c.bf16 %v571_v11, %v567_v9 }
 0x3a4   :  { %627 = vmatprep.subr.bf16.mxu0 %v577_v12 }
 0x3a5   :  { %628 = vmatpush1.bf16.msra.mxu0 %v576_v14  ;;  %v695_v14 = vpop.permute.xlu1 %694 }
 0x3a6   :  { %629 = vmatprep.subr.bf16.mxu0 %v575_v15 }
 0x3a9   :  { %630 = vmatpush1.bf16.msra.mxu0 %v574_v16 }
 0x3ac   :  { %1485 = vmatmul.mubr.msk.bf16.vlgmr.msra.gmra.mxu0 %vm347_vm0, %v1680_v17 }
 0x3ad   :  { %657 = vmatprep.mubr.bf16.mxu0 %v2168_v56 }
 0x3b4   :  { %1486 = vmatmul.mubr.msk.bf16.gmra.mxu0 %vm347_vm0, %v1681_v18 }
 0x3b5   :  { %749 = vmatprep.mubr.bf16.mxu0 %v2168_v56 }
 0x46c   :  { %v649_v21 = vpop.f32.mrf.mxu0 }
 0x46d   :  { %v650_v43 = vadd.f32 %v649_v21, %v585_v24 }
 0x46e   :  { %v651_v22 = vpop.f32.mrf.mxu0 }
 0x46f   :  { %v652_v63 = vadd.f32 %v651_v22, %v585_v24  ;;  %v668_v0 = vmax.f32 %v650_v43, 0.0 }
 0x470   :  { %v653_v23 = vpop.f32.mrf.mxu0 }
 0x471   :  { %v654_v33 = vadd.f32 %v653_v23, %v589_v29  ;;  %v669_v45 = vmax.f32 %v652_v63, 0.0 }
 0x472   :  { %v655_v25 = vpop.f32.mrf.mxu0 }
 0x473   :  { %v656_v31 = vadd.f32 %v655_v25, %v589_v29  ;;  %v670_v47 = vmax.f32 %v654_v33, 0.0 }
 0x474   :  { %v659_v26 = vpop.f32.mrf.mxu0 }
 0x475   :  { %v660_v59 = vadd.f32 %v659_v26, %v593_v20  ;;  %v671_v35 = vmax.f32 %v656_v31, 0.0  ;;  %v676_v50 = vpack.c.bf16 %v670_v47, %v668_v0 }
 0x476   :  { %v661_v27 = vpop.f32.mrf.mxu0 }
 0x477   :  { %v662_v32 = vadd.f32 %v661_v27, %v593_v20  ;;  %v672_v44 = vmax.f32 %v660_v59, 0.0  ;;  %v677_v49 = vpack.c.bf16 %v671_v35, %v669_v45  ;;  %v1763_v27 = vmov 2   ;;  %v1684_v35 = vld [vmem:[%s2157_s3 + $0x20] sm:$0xff]  }
 0x478   :  { %v663_v30 = vpop.f32.mrf.mxu0  ;;  %1615 = vset.pattern.permute.xlu1 %v1763_v27  ;;  %1616 = vset.pattern.permute.xlu0 %v1763_v27  ;;  %v1698_v27 = vld [vmem:[%s2155_s1 + $0x50] sm:$0xff]  }
 0x479   :  { %v664_v58 = vadd.f32 %v663_v30, %v597_v28  ;;  %v673_v41 = vmax.f32 %v662_v32, 0.0  ;;  %853 = vperm.xlu1 %1615, %v1921_v38   ;;  %857 = vperm.xlu0 %1616, %v1933_v40  }
 0x47a   :  { %v665_v62 = vpop.f32.mrf.mxu0 }
 0x47b   :  { %v666_v13 = vadd.f32 %v665_v62, %v597_v28  ;;  %v674_v34 = vmax.f32 %v664_v58, 0.0 }
 0x47d   :  { %v675_v42 = vmax.f32 %v666_v13, 0.0  ;;  %v678_v48 = vpack.c.bf16 %v674_v34, %v672_v44  ;;  %845 = vperm.xlu1 %1615, %v2169_v2  }
 0x47f   :  { %v679_v46 = vpack.c.bf16 %v675_v42, %v673_v41  ;;  %v1685_v41 = vld [vmem:[%s2157_s3 + $0x28] sm:$0xff]   ;;  %v1764_v42 = vmov 5  }
 0x480   :  { %1617 = vset.pattern.permute.xlu0 %v1764_v42 }
 0x481   :  { %729 = vmatprep.subr.bf16.mxu0 %v679_v46  ;;  %849 = vperm.xlu1 %1615, %v2170_v3  }
 0x482   :  { %730 = vmatpush1.bf16.msra.mxu0 %v678_v48  ;;  %947 = vperm.xlu0 %1617, %v2169_v2  }
 0x483   :  { %731 = vmatprep.subr.bf16.mxu0 %v677_v49 }
 0x485   :  { %1618 = vset.pattern.permute.xlu1 %v1764_v42 }
 0x486   :  { %732 = vmatpush1.bf16.msra.mxu0 %v676_v50  ;;  %951 = vperm.xlu1 %1618, %v2170_v3  }
 0x487   :  { %959 = vperm.xlu0 %1617, %v1933_v40  }
 0x489   :  { %1493 = vmatmul.mubr.msk.bf16.vlgmr.msra.gmra.mxu0 %vm347_vm0, %v1682_v51 }
 0x48a   :  { %759 = vmatprep.mubr.bf16.mxu0 %v2168_v56  ;;  %955 = vperm.xlu1 %1618, %v1921_v38  }
 0x491   :  { %1494 = vmatmul.mubr.msk.bf16.gmra.mxu0 %vm347_vm0, %v1683_v52 }
 0x492   :  { %908 = vmatprep.mubr.bf16.mxu0 %v2168_v56 }
 0x4f4   :  { %v854_v43 = vpop.permute.xlu1 %853  ;;  %v858_v50 = vpop.permute.xlu0 %857 }
 0x4f8   :  { %v846_v47 = vpop.permute.xlu1 %845 }
 0x4fc   :  { %v850_v51 = vpop.permute.xlu1 %849 }
 0x549   :  { %v751_v53 = vpop.f32.mrf.mxu0 }
 0x54a   :  { %v752_v36 = vadd.f32 %v751_v53, %v687_v55 }
 0x54b   :  { %v753_v54 = vpop.f32.mrf.mxu0 }
 0x54c   :  { %v754_v57 = vadd.f32 %v753_v54, %v687_v55  ;;  %v770_v8 = vmax.f32 %v752_v36, 0.0 }
 0x54d   :  { %v755_v60 = vpop.f32.mrf.mxu0 }
 0x54e   :  { %v756_v37 = vadd.f32 %v755_v60, %v691_v61  ;;  %v771_v6 = vmax.f32 %v754_v57, 0.0 }
 0x54f   :  { %v757_v39 = vpop.f32.mrf.mxu0 }
 0x550   :  { %v758_v1 = vadd.f32 %v757_v39, %v691_v61  ;;  %v772_v4 = vmax.f32 %v756_v37, 0.0 }
 0x551   :  { %v761_v5 = vpop.f32.mrf.mxu0 }
 0x552   :  { %v773_v7 = vmax.f32 %v758_v1, 0.0  ;;  %v778_v12 = vpack.c.bf16 %v772_v4, %v770_v8  ;;  %v762_v18 = vadd.f32 %v761_v5, %v695_v14 }
 0x553   :  { %v763_v9 = vpop.f32.mrf.mxu0 }
 0x554   :  { %v779_v11 = vpack.c.bf16 %v773_v7, %v771_v6  ;;  %v764_v16 = vadd.f32 %v763_v9, %v695_v14  ;;  %v774_v24 = vmax.f32 %v762_v18, 0.0  ;;  %v1689_v18 = vld [vmem:[%s2155_s1 + $0x38] sm:$0xff]  }
 0x555   :  { %v765_v15 = vpop.f32.mrf.mxu0 }
 0x556   :  { %v766_v17 = vadd.f32 %v765_v15, %v699_v10  ;;  %814 = vmatprep.mubr.bf16.mxu1 %v779_v11  ;;  %v775_v22 = vmax.f32 %v764_v16, 0.0  ;;  %v1688_v15 = vld [vmem:[%s2155_s1 + $0x78] sm:$0xff]  }
 0x557   :  { %v767_v19 = vpop.f32.mrf.mxu0  ;;  %815 = vmatmul.mubr.bf16.vlgmr.msra.gmra.mxu1 %v778_v12 }
 0x558   :  { %v768_v20 = vadd.f32 %v767_v19, %v699_v10  ;;  %v776_v21 = vmax.f32 %v766_v17, 0.0  ;;  %v1686_v17 = vld [vmem:[%s2157_s3 + $0x50] sm:$0xff]  }
 0x559   :  { %v1690_v19 = vld [vmem:[%s2155_s1 + $0x70] sm:$0xff]  }
 0x55a   :  { %v777_v23 = vmax.f32 %v768_v20, 0.0  ;;  %v780_v26 = vpack.c.bf16 %v776_v21, %v774_v24  ;;  %v1691_v20 = vld [vmem:[%s2155_s1 + $0x30] sm:$0xff]   ;;  %v1692_v21 = vld [vmem:[%s2155_s1 + $0x68] sm:$0xff]   ;;  %v1695_v24 = vld [vmem:[%s2155_s1 + $0x20] sm:$0xff]  }
 0x55c   :  { %v781_v25 = vpack.c.bf16 %v777_v23, %v775_v22  ;;  %v1687_v22 = vld [vmem:[%s2157_s3 + $0x58] sm:$0xff]   ;;  %v1693_v23 = vld [vmem:[%s2155_s1 + $0x28] sm:$0xff]  }
 0x55e   :  { %824 = vmatprep.mubr.bf16.mxu1 %v781_v25  ;;  %v1696_v25 = vld [vmem:[%s2155_s1 + $0x58] sm:$0xff]  }
 0x55f   :  { %825 = vmatmul.mubr.bf16.gmra.mxu1 %v780_v26  ;;  %v1697_v26 = vld [vmem:[%s2155_s1 + $0x18] sm:$0xff]  }
 0x617   :  { %v816_v28 = vpop.f32.mrf.mxu1 }
 0x619   :  { %v818_v29 = vpop.f32.mrf.mxu1 }
 0x61b   :  { %v820_v30 = vpop.f32.mrf.mxu1 }
 0x61c   :  { %v835_v34 = vpack.c.bf16 %v820_v30, %v816_v28  ;;  %v1699_v28 = vld [vmem:[%s2155_s1 + $0x10] sm:$0xff]   ;;  %v1701_v30 = vld [vmem:[%s2155_s1 + $0x8] sm:$0xff]  }
 0x61d   :  { %v822_v31 = vpop.f32.mrf.mxu1 }
 0x61e   :  { %v836_v33 = vpack.c.bf16 %v822_v31, %v818_v29  ;;  %v1700_v29 = vld [vmem:[%s2155_s1 + $0x48] sm:$0xff]   ;;  %v1702_v31 = vld [vmem:[%s2155_s1 + $0x40] sm:$0xff]  }
 0x61f   :  { %v826_v32 = vpop.f32.mrf.mxu1 }
 0x621   :  { %v828_v58 = vpop.f32.mrf.mxu1 }
 0x623   :  { %v830_v59 = vpop.f32.mrf.mxu1 }
 0x624   :  { %v837_v13 = vpack.c.bf16 %v830_v59, %v826_v32  ;;  %v1703_v32 = vld [vmem:[%s2155_s1] sm:$0xff]  }
 0x625   :  { %v832_v62 = vpop.f32.mrf.mxu1 }
 0x626   :  { %v838_v63 = vpack.c.bf16 %v832_v62, %v828_v58  ;;  %v948_v62 = vpop.permute.xlu0 %947 }
 0x628   :  { %888 = vmatprep.subr.bf16.mxu0 %v838_v63  ;;  %v952_v63 = vpop.permute.xlu1 %951 }
 0x629   :  { %889 = vmatpush1.bf16.msra.mxu0 %v837_v13 }
 0x62a   :  { %890 = vmatprep.subr.bf16.mxu0 %v836_v33 }
 0x62d   :  { %891 = vmatpush1.bf16.msra.mxu0 %v835_v34 }
 0x630   :  { %1501 = vmatmul.mubr.msk.bf16.vlgmr.msra.gmra.mxu0 %vm347_vm0, %v1684_v35 }
 0x631   :  { %918 = vmatprep.mubr.bf16.mxu0 %v2168_v56 }
 0x638   :  { %1502 = vmatmul.mubr.msk.bf16.gmra.mxu0 %vm347_vm0, %v1685_v41 }
 0x639   :  { %1010 = vmatprep.mubr.bf16.mxu0 %v2168_v56 }
 0x6f0   :  { %v910_v44 = vpop.f32.mrf.mxu0 }
 0x6f1   :  { %v911_v6 = vadd.f32 %v910_v44, %v846_v47 }
 0x6f2   :  { %v912_v45 = vpop.f32.mrf.mxu0 }
 0x6f3   :  { %v913_v57 = vadd.f32 %v912_v45, %v846_v47  ;;  %v929_v14 = vmax.f32 %v911_v6, 0.0  ;;  %v1765_v6 = vmov 6  }
 0x6f4   :  { %v914_v46 = vpop.f32.mrf.mxu0  ;;  %1619 = vset.pattern.permute.xlu1 %v1765_v6  ;;  %1620 = vset.pattern.permute.xlu0 %v1765_v6 }
 0x6f5   :  { %v915_v36 = vadd.f32 %v914_v46, %v850_v51  ;;  %v930_v8 = vmax.f32 %v913_v57, 0.0  ;;  %1236 = vperm.xlu1 %1619, %v1921_v38   ;;  %1240 = vperm.xlu0 %1620, %v1933_v40   ;;  %v1705_v40 = vld [vmem:[%s2157_s3 + $0x68] sm:$0xff]  }
 0x6f6   :  { %v916_v48 = vpop.f32.mrf.mxu0 }
 0x6f7   :  { %v917_v53 = vadd.f32 %v916_v48, %v850_v51  ;;  %v931_v10 = vmax.f32 %v915_v36, 0.0  ;;  %v956_v51 = vpop.permute.xlu1 %955 }
 0x6f8   :  { %v920_v49 = vpop.f32.mrf.mxu0 }
 0x6f9   :  { %v921_v61 = vadd.f32 %v920_v49, %v854_v43  ;;  %v932_v1 = vmax.f32 %v917_v53, 0.0  ;;  %v937_v16 = vpack.c.bf16 %v931_v10, %v929_v14  ;;  %v960_v49 = vpop.permute.xlu0 %959  ;;  %1228 = vperm.xlu1 %1619, %v2169_v2  }
 0x6fa   :  { %v922_v0 = vpop.f32.mrf.mxu0 }
 0x6fb   :  { %v923_v54 = vadd.f32 %v922_v0, %v854_v43  ;;  %v933_v7 = vmax.f32 %v921_v61, 0.0  ;;  %v938_v12 = vpack.c.bf16 %v932_v1, %v930_v8 }
 0x6fc   :  { %v924_v52 = vpop.f32.mrf.mxu0 }
 0x6fd   :  { %v925_v55 = vadd.f32 %v924_v52, %v858_v50  ;;  %v934_v4 = vmax.f32 %v923_v54, 0.0  ;;  %1232 = vperm.xlu1 %1619, %v2170_v3   ;;  %v1706_v3 = vld [vmem:[%s2157_s3 + $0x70] sm:$0xff]  }
 0x6fe   :  { %v926_v60 = vpop.f32.mrf.mxu0 }
 0x6ff   :  { %v927_v37 = vadd.f32 %v926_v60, %v858_v50  ;;  %v935_v39 = vmax.f32 %v925_v55, 0.0 }
 0x701   :  { %v936_v5 = vmax.f32 %v927_v37, 0.0  ;;  %v939_v11 = vpack.c.bf16 %v935_v39, %v933_v7 }
 0x703   :  { %v940_v9 = vpack.c.bf16 %v936_v5, %v934_v4  ;;  %v1704_v5 = vld [vmem:[%s2157_s3 + $0x60] sm:$0xff]  }
 0x704   :  { %1583 = vmatprep.mubr.msk.bf16.mxu1 %vm347_vm0, %v1704_v5 }
 0x705   :  { %990 = vmatprep.subr.bf16.mxu0 %v940_v9 }
 0x706   :  { %991 = vmatpush1.bf16.msra.mxu0 %v939_v11 }
 0x707   :  { %992 = vmatprep.subr.bf16.mxu0 %v938_v12 }
 0x70a   :  { %993 = vmatpush1.bf16.msra.mxu0 %v937_v16 }
 0x70b   :  { %1543 = vmatprep.subr.bf16.mxu0 %v1688_v15 }
 0x70d   :  { %1509 = vmatmul.mubr.msk.bf16.vlgmr.msra.gmra.mxu0 %vm347_vm0, %v1686_v17 }
 0x70e   :  { %1020 = vmatprep.mubr.bf16.mxu0 %v2168_v56  ;;  %1544 = vmatpush3.bf16.msra.mxu0 %v1689_v18  ;;  %v1694_v56 = vld [vmem:[%s2155_s1 + $0x60] sm:$0xff]  }
 0x70f   :  { %1545 = vmatprep.subr.bf16.mxu0 %v1690_v19 }
 0x712   :  { %1546 = vmatpush3.bf16.msra.mxu0 %v1691_v20 }
 0x713   :  { %1547 = vmatprep.subr.bf16.mxu0 %v1692_v21  ;;  %v1766_v21 = vmov 7  }
 0x714   :  { %1621 = vset.pattern.permute.xlu0 %v1766_v21 }
 0x715   :  { %1510 = vmatmul.mubr.msk.bf16.gmra.mxu0 %vm347_vm0, %v1687_v22  ;;  %1320 = vperm.xlu0 %1621, %v2169_v2   ;;  %v1707_v2 = vld [vmem:[%s2157_s3 + $0x78] sm:$0xff]   ;;  %s1767_s3 = smov [#allocation5]  }
 0x716   :  { %1548 = vmatpush3.bf16.msra.mxu0 %v1693_v23  ;;  %s1422_s20 = sshll.u32 %s1767_s3, 4  ;;  %s1423_s20 = int_to_ptr.vmem [resolvable:$true] %s1422_s20 }
 0x717   :  { %1549 = vmatprep.subr.bf16.mxu0 %v1694_v56  ;;  %s1732_s21 = scalar_lea.vmem %s1423_s20, 128  ;;  %p1737_p6 = scmp.lt.s32.totalorder %s1423_s20, %s1423_s20 }
 0x718   :  { %p1733_p5 = scmp.ne.s32.totalorder %s1423_s20, %s1732_s21  ;;  %p1738_p7 = scmp.lt.s32.totalorder %s1732_s21, %s1732_s21 }
 0x71a   :  { %1550 = vmatpush3.bf16.msra.mxu0 %v1695_v24  ;;  %p1739_p8 = por %p1738_p7, %p1737_p6 }
 0x71b   :  { %1551 = vmatprep.subr.bf16.mxu0 %v1696_v25 }
 0x71c   :  { %p1740_p9 = pnand %p1739_p8, %p1733_p5 }
 0x71e   :  { %1552 = vmatpush3.bf16.msra.mxu0 %v1697_v26 }
 0x71f   :  { %1553 = vmatprep.subr.bf16.mxu0 %v1698_v27 }
 0x722   :  { %1554 = vmatpush3.bf16.msra.mxu0 %v1699_v28 }
 0x723   :  { %1555 = vmatprep.subr.bf16.mxu0 %v1700_v29 }
 0x726   :  { %1556 = vmatpush3.bf16.msra.mxu0 %v1701_v30 }
 0x727   :  { %1557 = vmatprep.subr.bf16.mxu0 %v1702_v31 }
 0x72a   :  { %1558 = vmatpush3.bf16.msra.mxu0 %v1703_v32 }
 0x770   :  { %v1237_v22 = vpop.permute.xlu1 %1236  ;;  %v1241_v25 = vpop.permute.xlu0 %1240 }
 0x774   :  { %v1229_v23 = vpop.permute.xlu1 %1228 }
 0x778   :  { %v1233_v30 = vpop.permute.xlu1 %1232 }
 0x7cd   :  { %v1012_v58 = vpop.f32.mrf.mxu0 }
 0x7ce   :  { %v1013_v35 = vadd.f32 %v1012_v58, %v948_v62 }
 0x7cf   :  { %v1014_v59 = vpop.f32.mrf.mxu0 }
 0x7d0   :  { %v1015_v33 = vadd.f32 %v1014_v59, %v948_v62  ;;  %v1031_v47 = vmax.f32 %v1013_v35, 0.0  ;;  %v1321_v35 = vpop.permute.xlu0 %1320 }
 0x7d1   :  { %v1016_v13 = vpop.f32.mrf.mxu0 }
 0x7d2   :  { %v1017_v34 = vadd.f32 %v1016_v13, %v952_v63  ;;  %v1032_v45 = vmax.f32 %v1015_v33, 0.0 }
 0x7d3   :  { %v1018_v41 = vpop.f32.mrf.mxu0 }
 0x7d4   :  { %v1019_v42 = vadd.f32 %v1018_v41, %v952_v63  ;;  %v1033_v43 = vmax.f32 %v1017_v34, 0.0 }
 0x7d5   :  { %v1022_v44 = vpop.f32.mrf.mxu0 }
 0x7d6   :  { %v1034_v46 = vmax.f32 %v1019_v42, 0.0  ;;  %v1039_v50 = vpack.c.bf16 %v1033_v43, %v1031_v47  ;;  %v1023_v55 = vadd.f32 %v1022_v44, %v956_v51 }
 0x7d7   :  { %v1024_v48 = vpop.f32.mrf.mxu0 }
 0x7d8   :  { %v1040_v0 = vpack.c.bf16 %v1034_v46, %v1032_v45  ;;  %v1025_v53 = vadd.f32 %v1024_v48, %v956_v51  ;;  %v1035_v39 = vmax.f32 %v1023_v55, 0.0 }
 0x7d9   :  { %v1026_v52 = vpop.f32.mrf.mxu0 }
 0x7da   :  { %v1027_v54 = vadd.f32 %v1026_v52, %v960_v49  ;;  %1203 = vmatprep.mubr.bf16.mxu0 %v1040_v0  ;;  %v1036_v37 = vmax.f32 %v1025_v53, 0.0 }
 0x7db   :  { %v1028_v61 = vpop.f32.mrf.mxu0  ;;  %1204 = vmatmul.mubr.bf16.vlgmr.msra.gmra.mxu0 %v1039_v50 }
 0x7dc   :  { %v1029_v60 = vadd.f32 %v1028_v61, %v960_v49  ;;  %v1037_v57 = vmax.f32 %v1027_v54, 0.0 }
 0x7de   :  { %v1038_v36 = vmax.f32 %v1029_v60, 0.0  ;;  %v1041_v4 = vpack.c.bf16 %v1037_v57, %v1035_v39 }
 0x7e0   :  { %v1042_v1 = vpack.c.bf16 %v1038_v36, %v1036_v37 }
 0x7e2   :  { %1211 = vmatprep.mubr.bf16.mxu0 %v1042_v1 }
 0x7e3   :  { %1212 = vmatmul.mubr.bf16.gmra.mxu0 %v1041_v4 }
 0x7e4   :  { %1591 = vmatprep.mubr.msk.bf16.mxu0 %vm347_vm0, %v1706_v3 }
 0x89b   :  { %v1559_v7 = vpop.f32.mrf.mxu0 }
 0x89d   :  { %v1560_v8 = vpop.f32.mrf.mxu0 }
 0x89e   :  { %v1561_v19 = vadd.f32 %v1560_v8, %v1559_v7 }
 0x89f   :  { %v1562_v9 = vpop.f32.mrf.mxu0 }
 0x8a1   :  { %v1563_v10 = vpop.f32.mrf.mxu0 }
 0x8a2   :  { %v1564_v16 = vadd.f32 %v1563_v10, %v1562_v9 }
 0x8a3   :  { %v1565_v11 = vpop.f32.mrf.mxu0 }
 0x8a4   :  { %v1220_v38 = vpack.c.bf16 %v1564_v16, %v1561_v19 }
 0x8a5   :  { %v1566_v12 = vpop.f32.mrf.mxu0 }
 0x8a6   :  { %v1567_v17 = vadd.f32 %v1566_v12, %v1565_v11 }
 0x8a7   :  { %v1568_v14 = vpop.f32.mrf.mxu0 }
 0x8a9   :  { %v1569_v15 = vpop.f32.mrf.mxu0 }
 0x8aa   :  { %v1570_v18 = vadd.f32 %v1569_v15, %v1568_v14 }
 0x8ac   :  { %v1221_v20 = vpack.c.bf16 %v1570_v18, %v1567_v17 }
 0x8ae   :  { %1579 = vmatprep.subr.bf16.mxu1 %v1221_v20 }
 0x8af   :  { %1580 = vmatpush3.bf16.msra.mxu1 %v1221_v20 }
 0x8b0   :  { %1581 = vmatprep.subr.bf16.mxu1 %v1220_v38 }
 0x8b3   :  { %1582 = vmatpush3.bf16.msra.mxu1 %v1220_v38 }
 0x8b6   :  { %1584 = vmatmul.mubr.msk.bf16.vlgmr.msra.gmra.mxu1 %vm347_vm0, %v1705_v40 }
 0x976   :  { %v1585_v56 = vpop.f32.mrf.mxu1 }
 0x977   :  { %v1302_v26 = vadd.f32 %v1585_v56, %v1237_v22 }
 0x978   :  { %v1293_v24 = vpop.f32.mrf.mxu1 }
 0x979   :  { %v1294_v28 = vadd.f32 %v1293_v24, %v1229_v23  ;;  %v1310_v32 = vmax.f32 %v1302_v26, 0.0 }
 0x97a   :  { %v1586_v27 = vpop.f32.mrf.mxu1 }
 0x97b   :  { %v1305_v29 = vadd.f32 %v1586_v27, %v1241_v25  ;;  %v1308_v62 = vmax.f32 %v1294_v28, 0.0 }
 0x97c   :  { %v1296_v31 = vpop.f32.mrf.mxu1 }
 0x97d   :  { %v1311_v58 = vmax.f32 %v1305_v29, 0.0  ;;  %v1297_v59 = vadd.f32 %v1296_v31, %v1233_v30 }
 0x97f   :  { %v1318_v63 = vpack.c.bf16 %v1311_v58, %v1310_v32  ;;  %v1309_v13 = vmax.f32 %v1297_v59, 0.0 }
 0x981   :  { %v1317_v33 = vpack.c.bf16 %v1309_v13, %v1308_v62  ;;  %1587 = vmatprep.subr.bf16.mxu0 %v1318_v63 }
 0x982   :  { %1588 = vmatpush3.bf16.msra.mxu0 %v1318_v63 }
 0x983   :  { %1589 = vmatprep.subr.bf16.mxu0 %v1317_v33 }
 0x986   :  { %1590 = vmatpush3.bf16.msra.mxu0 %v1317_v33 }
 0x989   :  { %1592 = vmatmul.mubr.msk.bf16.vlgmr.msra.gmra.mxu0 %vm347_vm0, %v1707_v2 }
 0xa49   :  { %v1593_v34 = vpop.f32.mrf.mxu0 }
 0xa4b   :  { %v1382_v41 = vpop.f32.mrf.mxu0 }
 0xa4c   :  { %v1383_v42 = vadd.f32 %v1382_v41, %v1321_v35 }
 0xa4d   :  { %v1594_v43 = vpop.f32.mrf.mxu0 }
 0xa4e   :  { %v1395_v44 = vsel %vm1394_vm1, %v1383_v42, -inf }
 0xa4f   :  { %v1396_v45 = vrot.slane %v1395_v44, 4  ;;  %v1385_v46 = vpop.f32.mrf.mxu0 }
 0xa51   :  { %v1397_v47 = vmax.f32 %v1395_v44, %v1396_v45 }
 0xa53   :  { %v1398_v48 = vrot.slane %v1397_v47, 2 }
 0xa55   :  { %v1399_v49 = vmax.f32 %v1397_v47, %v1398_v48 }
 0xa57   :  { %v1400_v0 = vrot.slane %v1399_v49, 1 }
 0xa59   :  { %v1401_v50 = vmax.f32 %v1399_v49, %v1400_v0 }
 0xa5b   :  { %v1402_v51 = vsub.f32 %v1383_v42, %v1401_v50 }
 0xa5d   :  { %v1403_v52 = vmul.f32 1.442695, %v1402_v51 }
 0xa5f   :  { %1708 = vpow2.f32 %v1403_v52 }
 0xa6c   :  { %v1709_v53 = vpop.eup %1708 }
 0xa6d   :  { %v1405_v54 = vsel %vm1394_vm1, %v1709_v53, 0.0 }
 0xa6e   :  { %v1406_v55 = vrot.slane %v1405_v54, 4 }
 0xa70   :  { %v1407_v61 = vadd.f32 %v1406_v55, %v1405_v54 }
 0xa72   :  { %v1408_v60 = vrot.slane %v1407_v61, 2 }
 0xa74   :  { %v1409_v57 = vadd.f32 %v1408_v60, %v1407_v61 }
 0xa76   :  { %v1410_v37 = vrot.slane %v1409_v57, 1 }
 0xa78   :  { %v1411_v36 = vadd.f32 %v1410_v37, %v1409_v57 }
 0xa7a   :  { %1710 = vlog2.f32 %v1411_v36 }
 0xa87   :  { %v1711_v39 = vpop.eup %1710 }
 0xa88   :  { %v1413_v1 = vmul.f32 0.6931472, %v1711_v39 }
 0xa8a   :  { %v1414_v4 = vsub.f32 %v1402_v51, %v1413_v1 }
 0xa8c   :  { %1415 = vst.msk [vmem:[#allocation5] sm:$0xff] %vm1394_vm1, %v1414_v4 }
 0xa8d   :  { %1743 = shalt.err (!%p1740_p9)
}
 0xa8e   :  { %1425 = dma.vmem_to_hbm [thread:$0]  %s1423_s20, 128, %s2159_s5, [#allocation4]  }
 0xa8f   :  { %1754 = dma.done.wait [#allocation4], 128  }
 0xa90   :  { %1755 = vsyncadd [#allocation4], 4294967168 }
 0xa91   :  { %1429 = vsyncpa [#allocation3], 1 }
 0xa92   :  { %1430 = vsyncpa [#allocation4], 1 }

</bundles_post_ra>
